<compile_context>
chip_gen: v7x
topology: tpu7x:2x2x1
jax: 0.10.0
libtpu: 0.0.40
codegen_flags: <defaults>
</compile_context>

<pallas_src>
import jax
import jax.numpy as jnp
from jax import lax
from jax.experimental import pallas as pl
from jax.experimental.pallas import tpu as pltpu

LN_EPS = 1e-12


def _round_up(x, m):
    return (x + m - 1) // m * m


def _device_kind():
    try:
        return jax.devices()[0].device_kind.lower()
    except Exception:
        return ""


def _is_v7():
    kind = _device_kind()
    return any(t in kind for t in ("v7", "7x", "tpu7"))


def _vmem_limit_bytes():
    # v7x: 64 MiB physical VMEM per TensorCore -> cap at 48 MiB headroom;
    # v5e/v6e: 128 MiB physical -> 64 MiB scoped limit.
    return (48 if _is_v7() else 64) * 1024 * 1024


def _choose_row_tile(rows, requested):
    """Pick a row tile: multiple of 8 sublanes, never larger than the row count,
    near the HBM roofline knee (512/1024 rows), and on v7x split so the grid has
    >= 2 similar-sized steps (megacore sharding of the 'parallel' axis)."""
    cap = max(8, (rows // 8) * 8)               # largest 8-multiple <= rows
    if requested is not None:
        return min(max(8, _round_up(requested, 8)), cap)
    big = 512 if _is_v7() else 1024
    if _is_v7() and rows > 512:
        tile = max(256, _round_up(pl.cdiv(rows, 2), 256))
    else:
        tile = big
    return min(tile, cap)


def _layer_norm(x, gamma, beta, inv_n):
    # Single-pass variance: sum(x) and sum(x*x) are independent lane reductions
    # (pipeline through the XLU); clamp var >= 0 against f32 cancellation.
    s = jnp.sum(x, axis=-1, keepdims=True)
    s2 = jnp.sum(x * x, axis=-1, keepdims=True)
    mu = s * inv_n
    var = jnp.maximum(s2 * inv_n - mu * mu, 0.0)
    return (x - mu) * lax.rsqrt(var + LN_EPS) * gamma + beta


def visual_feat_encoder_kernel(feats_ref, boxes_ref, wv_ref, wb_ref, params_ref,
                               out_ref):
    # Packed per-channel params: rows 0..5 = bv, gv, betav, bb, gb, betab.
    p = params_ref[...]
    bv, gv, betav = p[0:1, :], p[1:2, :], p[2:3, :]
    bb, gb, betab = p[3:4, :], p[4:5, :], p[5:6, :]

    inv_h = 1.0 / out_ref.shape[-1]

    # visn_fc: cast the feats tile to the weight dtype (bf16) *inside* the
    # kernel (hides under the DMA, avoids an extra XLA pass over feats in HBM),
    # MXU matmul with f32 accumulation; LayerNorm stays in f32.
    x = jnp.dot(feats_ref[...].astype(wv_ref.dtype), wv_ref[...],
                preferred_element_type=jnp.float32)
    x = _layer_norm(x + bv, gv, betav, inv_h)

    # box_fc: K = pos_dim (typically 4) -> one cheap MXU K-pass in f32; keeps
    # the VPU free for the two f32 LayerNorms.
    y = jnp.dot(boxes_ref[...].astype(jnp.float32), wb_ref[...],
                preferred_element_type=jnp.float32)
    y = _layer_norm(y + bb, gb, betab, inv_h)

    # (x + y) / 2 ; dropout is identity in eval mode.
    # TODO(synk): training-mode dropout (hidden_dropout_prob) not implemented.
    out_ref[...] = ((x + y) * 0.5).astype(out_ref.dtype)


def _build_call(*, rows_out, row_tile, feat_dim, pos_dim, hidden, out_dtype,
                grid, single_buffer_weights):
    def weight_spec(shape):
        # Grid-invariant operands: single-buffer to reclaim VMEM (esp. v7x).
        if single_buffer_weights:
            return pl.BlockSpec(shape, lambda i: (0, 0),
                                pipeline_mode=pl.Buffered(1))
        return pl.BlockSpec(shape, lambda i: (0, 0))

    return pl.pallas_call(
        visual_feat_encoder_kernel,
        out_shape=jax.ShapeDtypeStruct((rows_out, hidden), out_dtype),
        grid_spec=pltpu.PrefetchScalarGridSpec(
            num_scalar_prefetch=0,
            grid=grid,
            in_specs=[
                pl.BlockSpec((row_tile, feat_dim), lambda i: (i, 0)),  # feats tile
                pl.BlockSpec((row_tile, pos_dim), lambda i: (i, 0)),   # boxes tile
                weight_spec((feat_dim, hidden)),                       # Wv
                weight_spec((pos_dim, hidden)),                        # Wb
                weight_spec((8, hidden)),                              # packed params
            ],
            out_specs=pl.BlockSpec((row_tile, hidden), lambda i: (i, 0)),
        ),
        compiler_params=pltpu.CompilerParams(
            dimension_semantics=("parallel",),
            vmem_limit_bytes=_vmem_limit_bytes(),
        ),
    )


def visual_feat_encoder(feats, boxes, params, *, row_tile=None, use_bf16=True,
                        out_dtype=None):
    """feats: [B, S, feat_dim], boxes: [B, S, pos_dim] -> [B, S, hidden]."""
    # TODO(synk): boxes=None branch of the PyTorch module (output = x only) is
    # not lowered here; the wrapper requires boxes.
    B, S, feat_dim = feats.shape
    _, _, pos_dim = boxes.shape
    hidden = params["wv"].shape[1]
    out_dtype = feats.dtype if out_dtype is None else out_dtype

    rows = B * S
    # No wrapper-side pad / cast of feats: the kernel reads it exactly once.
    feats2d = feats.reshape(rows, feat_dim)
    boxes2d = boxes.reshape(rows, pos_dim)

    padded_rows = rows
    if rows < 8:  # corner case: sublane alignment (negligible copy)
        feats2d = jnp.pad(feats2d, ((0, 8 - rows), (0, 0)))
        boxes2d = jnp.pad(boxes2d, ((0, 8 - rows), (0, 0)))
        padded_rows = 8

    row_tile = _choose_row_tile(padded_rows, row_tile)
    # Non-divisible row counts -> Pallas partial final block (OOB writes dropped).
    grid = (pl.cdiv(padded_rows, row_tile),)

    # One-time tiny weight casts (weights are small and grid-invariant).
    wv = params["wv"].astype(jnp.bfloat16 if use_bf16 else jnp.float32)
    wb = params["wb"].astype(jnp.float32)

    # Pack the six (hidden,) vectors into one (8, hidden) block (single DMA).
    zeros = jnp.zeros((hidden,), jnp.float32)
    packed = jnp.stack(
        [params["bv"], params["gv"], params["betav"],
         params["bb"], params["gb"], params["betab"], zeros, zeros],
        axis=0,
    ).astype(jnp.float32)

    args = (feats2d, boxes2d, wv, wb, packed)
    call_kwargs = dict(rows_out=padded_rows, row_tile=row_tile,
                       feat_dim=feat_dim, pos_dim=pos_dim, hidden=hidden,
                       out_dtype=out_dtype, grid=grid)
    try:
        out2d = _build_call(single_buffer_weights=True, **call_kwargs)(*args)
    except Exception:
        # TODO(synk): pipeline_mode=pl.Buffered(1) unsupported on this jax/libtpu;
        # fall back to default double-buffering of the grid-invariant operands.
        out2d = _build_call(single_buffer_weights=False, **call_kwargs)(*args)

    return out2d[:rows].reshape(B, S, hidden)


def init_params(key, feat_dim, pos_dim, hidden):
    k1, k2, k3, k4 = jax.random.split(key, 4)
    # nn.Linear-style init (uniform in +-1/sqrt(fan_in)), deterministic via PRNGKey.
    wv = jax.random.uniform(k1, (feat_dim, hidden), jnp.float32,
                            -1.0 / feat_dim ** 0.5, 1.0 / feat_dim ** 0.5)
    bv = jax.random.uniform(k2, (hidden,), jnp.float32,
                            -1.0 / feat_dim ** 0.5, 1.0 / feat_dim ** 0.5)
    wb = jax.random.uniform(k3, (pos_dim, hidden), jnp.float32,
                            -1.0 / pos_dim ** 0.5, 1.0 / pos_dim ** 0.5)
    bb = jax.random.uniform(k4, (hidden,), jnp.float32,
                            -1.0 / pos_dim ** 0.5, 1.0 / pos_dim ** 0.5)
    return {
        "wv": wv, "bv": bv,
        "gv": jnp.ones((hidden,), jnp.float32),
        "betav": jnp.zeros((hidden,), jnp.float32),
        "wb": wb, "bb": bb,
        "gb": jnp.ones((hidden,), jnp.float32),
        "betab": jnp.zeros((hidden,), jnp.float32),
    }


def reference(feats, boxes, p):
    x = feats @ p["wv"] + p["bv"]
    mu = x.mean(-1, keepdims=True)
    var = ((x - mu) ** 2).mean(-1, keepdims=True)
    x = (x - mu) / jnp.sqrt(var + LN_EPS) * p["gv"] + p["betav"]
    y = boxes @ p["wb"] + p["bb"]
    mu = y.mean(-1, keepdims=True)
    var = ((y - mu) ** 2).mean(-1, keepdims=True)
    y = (y - mu) / jnp.sqrt(var + LN_EPS) * p["gb"] + p["betab"]
    return (x + y) / 2


if __name__ == "__main__":
    feat_dim, pos_dim, hidden = 32, 4, 128
    key = jax.random.PRNGKey(0)
    kf, kb, kp = jax.random.split(key, 3)
    params = init_params(kp, feat_dim, pos_dim, hidden)

    # Case 1: small, single block covers all rows (auto tile).
    B, S = 2, 8
    feats = jax.random.normal(kf, (B, S, feat_dim), jnp.float32)
    boxes = jax.random.uniform(kb, (B, S, pos_dim), jnp.float32)
    out = jax.block_until_ready(visual_feat_encoder(feats, boxes, params))
    ref = reference(feats, boxes, params)
    assert out.shape == (B, S, hidden)
    assert jnp.allclose(out, ref, atol=5e-2, rtol=5e-2), "case 1 mismatch"

    # Case 2: rows not a multiple of the tile -> multi-step grid with a partial
    # final block handled by Pallas (no wrapper-side padding pass over feats).
    B2, S2 = 3, 7
    feats2 = jax.random.normal(kf, (B2, S2, feat_dim), jnp.float32)
    boxes2 = jax.random.uniform(kb, (B2, S2, pos_dim), jnp.float32)
    out2 = jax.block_until_ready(
        visual_feat_encoder(feats2, boxes2, params, row_tile=16))
    ref2 = reference(feats2, boxes2, params)
    assert out2.shape == (B2, S2, hidden)
    assert jnp.allclose(out2, ref2, atol=5e-2, rtol=5e-2), "case 2 mismatch"

    print("KERNEL_OK")
</pallas_src>

<mosaic_0001>
module attributes {stable_mosaic.version = 11 : i64} {
  func.func @visual_feat_encoder_kernel(%arg0: i32, %arg1: memref<16x32xf32, #tpu.memory_space<vmem>>, %arg2: memref<16x4xf32, #tpu.memory_space<vmem>>, %arg3: memref<32x128xbf16, #tpu.memory_space<vmem>>, %arg4: memref<4x128xf32, #tpu.memory_space<vmem>>, %arg5: memref<8x128xf32, #tpu.memory_space<vmem>>, %arg6: memref<16x128xf32, #tpu.memory_space<vmem>>) attributes {dimension_semantics = [#tpu.dimension_semantics<parallel>], iteration_bounds = array<i64: 1>, scalar_prefetch = 0 : i64, scratch_operands = 0 : i64, tpu.core_type = #tpu.core_type<tc>, window_params = [{transform_indices = @transform_0, window_bounds = array<i64: 16, 32>}, {transform_indices = @transform_1, window_bounds = array<i64: 16, 4>}, {pipeline_mode = #tpu.pipeline_mode<synchronous>, transform_indices = @transform_2, window_bounds = array<i64: 32, 128>}, {pipeline_mode = #tpu.pipeline_mode<synchronous>, transform_indices = @transform_3, window_bounds = array<i64: 4, 128>}, {pipeline_mode = #tpu.pipeline_mode<synchronous>, transform_indices = @transform_4, window_bounds = array<i64: 8, 128>}, {transform_indices = @transform_5, window_bounds = array<i64: 16, 128>}]} {
    %c0 = arith.constant 0 : index
    %c0_0 = arith.constant 0 : index
    %0 = vector.load %arg5[%c0, %c0_0] : memref<8x128xf32, #tpu.memory_space<vmem>>, vector<8x128xf32>
    %1 = vector.extract_strided_slice %0 {offsets = [0, 0], sizes = [1, 128], strides = [1, 1]} : vector<8x128xf32> to vector<1x128xf32>
    %2 = vector.extract_strided_slice %0 {offsets = [1, 0], sizes = [1, 128], strides = [1, 1]} : vector<8x128xf32> to vector<1x128xf32>
    %3 = vector.extract_strided_slice %0 {offsets = [2, 0], sizes = [1, 128], strides = [1, 1]} : vector<8x128xf32> to vector<1x128xf32>
    %4 = vector.extract_strided_slice %0 {offsets = [3, 0], sizes = [1, 128], strides = [1, 1]} : vector<8x128xf32> to vector<1x128xf32>
    %5 = vector.extract_strided_slice %0 {offsets = [4, 0], sizes = [1, 128], strides = [1, 1]} : vector<8x128xf32> to vector<1x128xf32>
    %6 = vector.extract_strided_slice %0 {offsets = [5, 0], sizes = [1, 128], strides = [1, 1]} : vector<8x128xf32> to vector<1x128xf32>
    %c0_1 = arith.constant 0 : index
    %c0_2 = arith.constant 0 : index
    %7 = vector.load %arg1[%c0_1, %c0_2] : memref<16x32xf32, #tpu.memory_space<vmem>>, vector<16x32xf32>
    %8 = arith.truncf %7 : vector<16x32xf32> to vector<16x32xbf16>
    %c0_3 = arith.constant 0 : index
    %c0_4 = arith.constant 0 : index
    %9 = vector.load %arg3[%c0_3, %c0_4] : memref<32x128xbf16, #tpu.memory_space<vmem>>, vector<32x128xbf16>
    %cst = arith.constant dense<0.000000e+00> : vector<16x128xf32>
    %10 = tpu.matmul %8, %9, %cst {dimension_numbers = #tpu.dot_dimension_numbers<[1], [0], [0], [1], [0, 0, 1, 1], [], []>} : vector<16x32xbf16>, vector<32x128xbf16>, vector<16x128xf32> -> vector<16x128xf32>
    %11 = vector.broadcast %1 : vector<1x128xf32> to vector<16x128xf32>
    %12 = arith.addf %10, %11 : vector<16x128xf32>
    %cst_5 = arith.constant dense<0.000000e+00> : vector<16xf32>
    %13 = vector.multi_reduction <add>, %12, %cst_5 [1] : vector<16x128xf32> to vector<16xf32>
    %14 = vector.shape_cast %13 : vector<16xf32> to vector<16x1xf32>
    %15 = arith.mulf %12, %12 : vector<16x128xf32>
    %cst_6 = arith.constant dense<0.000000e+00> : vector<16xf32>
    %16 = vector.multi_reduction <add>, %15, %cst_6 [1] : vector<16x128xf32> to vector<16xf32>
    %17 = vector.shape_cast %16 : vector<16xf32> to vector<16x1xf32>
    %cst_7 = arith.constant 7.812500e-03 : f32
    %18 = vector.broadcast %cst_7 : f32 to vector<16x1xf32>
    %19 = arith.mulf %14, %18 : vector<16x1xf32>
    %cst_8 = arith.constant 7.812500e-03 : f32
    %20 = vector.broadcast %cst_8 : f32 to vector<16x1xf32>
    %21 = arith.mulf %17, %20 : vector<16x1xf32>
    %22 = arith.mulf %19, %19 : vector<16x1xf32>
    %23 = arith.subf %21, %22 : vector<16x1xf32>
    %cst_9 = arith.constant 0.000000e+00 : f32
    %24 = vector.broadcast %cst_9 : f32 to vector<16x1xf32>
    %25 = arith.maximumf %23, %24 : vector<16x1xf32>
    %26 = vector.broadcast %19 : vector<16x1xf32> to vector<16x128xf32>
    %27 = arith.subf %12, %26 : vector<16x128xf32>
    %cst_10 = arith.constant 9.99999996E-13 : f32
    %28 = vector.broadcast %cst_10 : f32 to vector<16x1xf32>
    %29 = arith.addf %25, %28 : vector<16x1xf32>
    %30 = math.rsqrt %29 : vector<16x1xf32>
    %31 = vector.broadcast %30 : vector<16x1xf32> to vector<16x128xf32>
    %32 = arith.mulf %27, %31 : vector<16x128xf32>
    %33 = vector.broadcast %2 : vector<1x128xf32> to vector<16x128xf32>
    %34 = arith.mulf %32, %33 : vector<16x128xf32>
    %35 = vector.broadcast %3 : vector<1x128xf32> to vector<16x128xf32>
    %36 = arith.addf %34, %35 : vector<16x128xf32>
    %c0_11 = arith.constant 0 : index
    %c0_12 = arith.constant 0 : index
    %37 = vector.load %arg2[%c0_11, %c0_12] : memref<16x4xf32, #tpu.memory_space<vmem>>, vector<16x4xf32>
    %c0_13 = arith.constant 0 : index
    %c0_14 = arith.constant 0 : index
    %38 = vector.load %arg4[%c0_13, %c0_14] : memref<4x128xf32, #tpu.memory_space<vmem>>, vector<4x128xf32>
    %cst_15 = arith.constant dense<0.000000e+00> : vector<16x128xf32>
    %39 = tpu.matmul %37, %38, %cst_15 {dimension_numbers = #tpu.dot_dimension_numbers<[1], [0], [0], [1], [0, 0, 1, 1], [], []>} : vector<16x4xf32>, vector<4x128xf32>, vector<16x128xf32> -> vector<16x128xf32>
    %40 = vector.broadcast %4 : vector<1x128xf32> to vector<16x128xf32>
    %41 = arith.addf %39, %40 : vector<16x128xf32>
    %cst_16 = arith.constant dense<0.000000e+00> : vector<16xf32>
    %42 = vector.multi_reduction <add>, %41, %cst_16 [1] : vector<16x128xf32> to vector<16xf32>
    %43 = vector.shape_cast %42 : vector<16xf32> to vector<16x1xf32>
    %44 = arith.mulf %41, %41 : vector<16x128xf32>
    %cst_17 = arith.constant dense<0.000000e+00> : vector<16xf32>
    %45 = vector.multi_reduction <add>, %44, %cst_17 [1] : vector<16x128xf32> to vector<16xf32>
    %46 = vector.shape_cast %45 : vector<16xf32> to vector<16x1xf32>
    %cst_18 = arith.constant 7.812500e-03 : f32
    %47 = vector.broadcast %cst_18 : f32 to vector<16x1xf32>
    %48 = arith.mulf %43, %47 : vector<16x1xf32>
    %cst_19 = arith.constant 7.812500e-03 : f32
    %49 = vector.broadcast %cst_19 : f32 to vector<16x1xf32>
    %50 = arith.mulf %46, %49 : vector<16x1xf32>
    %51 = arith.mulf %48, %48 : vector<16x1xf32>
    %52 = arith.subf %50, %51 : vector<16x1xf32>
    %cst_20 = arith.constant 0.000000e+00 : f32
    %53 = vector.broadcast %cst_20 : f32 to vector<16x1xf32>
    %54 = arith.maximumf %52, %53 : vector<16x1xf32>
    %55 = vector.broadcast %48 : vector<16x1xf32> to vector<16x128xf32>
    %56 = arith.subf %41, %55 : vector<16x128xf32>
    %cst_21 = arith.constant 9.99999996E-13 : f32
    %57 = vector.broadcast %cst_21 : f32 to vector<16x1xf32>
    %58 = arith.addf %54, %57 : vector<16x1xf32>
    %59 = math.rsqrt %58 : vector<16x1xf32>
    %60 = vector.broadcast %59 : vector<16x1xf32> to vector<16x128xf32>
    %61 = arith.mulf %56, %60 : vector<16x128xf32>
    %62 = vector.broadcast %5 : vector<1x128xf32> to vector<16x128xf32>
    %63 = arith.mulf %61, %62 : vector<16x128xf32>
    %64 = vector.broadcast %6 : vector<1x128xf32> to vector<16x128xf32>
    %65 = arith.addf %63, %64 : vector<16x128xf32>
    %66 = arith.addf %36, %65 : vector<16x128xf32>
    %cst_22 = arith.constant 5.000000e-01 : f32
    %67 = vector.broadcast %cst_22 : f32 to vector<16x128xf32>
    %68 = arith.mulf %66, %67 : vector<16x128xf32>
    %c0_23 = arith.constant 0 : index
    %c0_24 = arith.constant 0 : index
    %69 = vector.load %arg6[%c0_23, %c0_24] : memref<16x128xf32, #tpu.memory_space<vmem>>, vector<16x128xf32>
    tpu.vector_store %arg6[%c0_23, %c0_24], %68 {strides = array<i32>} : memref<16x128xf32, #tpu.memory_space<vmem>>, vector<16x128xf32>,
    return
  }
  func.func @transform_0(%arg0: i32) -> (i32, i32) {
    %c0_i32 = arith.constant 0 : i32
    %c0_i32_0 = arith.constant 0 : i32
    return %arg0, %c0_i32 : i32, i32
  }
  func.func @transform_1(%arg0: i32) -> (i32, i32) {
    %c0_i32 = arith.constant 0 : i32
    %c0_i32_0 = arith.constant 0 : i32
    return %arg0, %c0_i32 : i32, i32
  }
  func.func @transform_2(%arg0: i32) -> (i32, i32) {
    %c0_i32 = arith.constant 0 : i32
    %c0_i32_0 = arith.constant 0 : i32
    %c0_i32_1 = arith.constant 0 : i32
    return %c0_i32, %c0_i32_0 : i32, i32
  }
  func.func @transform_3(%arg0: i32) -> (i32, i32) {
    %c0_i32 = arith.constant 0 : i32
    %c0_i32_0 = arith.constant 0 : i32
    %c0_i32_1 = arith.constant 0 : i32
    return %c0_i32, %c0_i32_0 : i32, i32
  }
  func.func @transform_4(%arg0: i32) -> (i32, i32) {
    %c0_i32 = arith.constant 0 : i32
    %c0_i32_0 = arith.constant 0 : i32
    %c0_i32_1 = arith.constant 0 : i32
    return %c0_i32, %c0_i32_0 : i32, i32
  }
  func.func @transform_5(%arg0: i32) -> (i32, i32) {
    %c0_i32 = arith.constant 0 : i32
    %c0_i32_0 = arith.constant 0 : i32
    return %arg0, %c0_i32 : i32, i32
  }
}

module attributes {stable_mosaic.version = 11 : i64} {
  func.func @visual_feat_encoder_kernel(%arg0: i32, %arg1: memref<16x32xf32, #tpu.memory_space<vmem>>, %arg2: memref<16x4xf32, #tpu.memory_space<vmem>>, %arg3: memref<32x128xbf16, #tpu.memory_space<vmem>>, %arg4: memref<4x128xf32, #tpu.memory_space<vmem>>, %arg5: memref<8x128xf32, #tpu.memory_space<vmem>>, %arg6: memref<16x128xf32, #tpu.memory_space<vmem>>) attributes {dimension_semantics = [#tpu.dimension_semantics<parallel>], iteration_bounds = array<i64: 1>, scalar_prefetch = 0 : i64, scratch_operands = 0 : i64, tpu.core_type = #tpu.core_type<tc>, window_params = [{transform_indices = @transform_0, window_bounds = array<i64: 16, 32>}, {transform_indices = @transform_1, window_bounds = array<i64: 16, 4>}, {pipeline_mode = #tpu.pipeline_mode<synchronous>, transform_indices = @transform_2, window_bounds = array<i64: 32, 128>}, {pipeline_mode = #tpu.pipeline_mode<synchronous>, transform_indices = @transform_3, window_bounds = array<i64: 4, 128>}, {pipeline_mode = #tpu.pipeline_mode<synchronous>, transform_indices = @transform_4, window_bounds = array<i64: 8, 128>}, {transform_indices = @transform_5, window_bounds = array<i64: 16, 128>}]} {
    %c0 = arith.constant 0 : index
    %c0_0 = arith.constant 0 : index
    %0 = vector.load %arg5[%c0, %c0_0] : memref<8x128xf32, #tpu.memory_space<vmem>>, vector<8x128xf32>
    %1 = vector.extract_strided_slice %0 {offsets = [0, 0], sizes = [1, 128], strides = [1, 1]} : vector<8x128xf32> to vector<1x128xf32>
    %2 = vector.extract_strided_slice %0 {offsets = [1, 0], sizes = [1, 128], strides = [1, 1]} : vector<8x128xf32> to vector<1x128xf32>
    %3 = vector.extract_strided_slice %0 {offsets = [2, 0], sizes = [1, 128], strides = [1, 1]} : vector<8x128xf32> to vector<1x128xf32>
    %4 = vector.extract_strided_slice %0 {offsets = [3, 0], sizes = [1, 128], strides = [1, 1]} : vector<8x128xf32> to vector<1x128xf32>
    %5 = vector.extract_strided_slice %0 {offsets = [4, 0], sizes = [1, 128], strides = [1, 1]} : vector<8x128xf32> to vector<1x128xf32>
    %6 = vector.extract_strided_slice %0 {offsets = [5, 0], sizes = [1, 128], strides = [1, 1]} : vector<8x128xf32> to vector<1x128xf32>
    %c0_1 = arith.constant 0 : index
    %c0_2 = arith.constant 0 : index
    %7 = vector.load %arg1[%c0_1, %c0_2] : memref<16x32xf32, #tpu.memory_space<vmem>>, vector<16x32xf32>
    %8 = arith.truncf %7 : vector<16x32xf32> to vector<16x32xbf16>
    %c0_3 = arith.constant 0 : index
    %c0_4 = arith.constant 0 : index
    %9 = vector.load %arg3[%c0_3, %c0_4] : memref<32x128xbf16, #tpu.memory_space<vmem>>, vector<32x128xbf16>
    %cst = arith.constant dense<0.000000e+00> : vector<16x128xf32>
    %10 = tpu.matmul %8, %9, %cst {dimension_numbers = #tpu.dot_dimension_numbers<[1], [0], [0], [1], [0, 0, 1, 1], [], []>} : vector<16x32xbf16>, vector<32x128xbf16>, vector<16x128xf32> -> vector<16x128xf32>
    %11 = vector.broadcast %1 : vector<1x128xf32> to vector<16x128xf32>
    %12 = arith.addf %10, %11 : vector<16x128xf32>
    %cst_5 = arith.constant dense<0.000000e+00> : vector<16xf32>
    %13 = vector.multi_reduction <add>, %12, %cst_5 [1] : vector<16x128xf32> to vector<16xf32>
    %14 = vector.shape_cast %13 : vector<16xf32> to vector<16x1xf32>
    %15 = arith.mulf %12, %12 : vector<16x128xf32>
    %cst_6 = arith.constant dense<0.000000e+00> : vector<16xf32>
    %16 = vector.multi_reduction <add>, %15, %cst_6 [1] : vector<16x128xf32> to vector<16xf32>
    %17 = vector.shape_cast %16 : vector<16xf32> to vector<16x1xf32>
    %cst_7 = arith.constant 7.812500e-03 : f32
    %18 = vector.broadcast %cst_7 : f32 to vector<16x1xf32>
    %19 = arith.mulf %14, %18 : vector<16x1xf32>
    %cst_8 = arith.constant 7.812500e-03 : f32
    %20 = vector.broadcast %cst_8 : f32 to vector<16x1xf32>
    %21 = arith.mulf %17, %20 : vector<16x1xf32>
    %22 = arith.mulf %19, %19 : vector<16x1xf32>
    %23 = arith.subf %21, %22 : vector<16x1xf32>
    %cst_9 = arith.constant 0.000000e+00 : f32
    %24 = vector.broadcast %cst_9 : f32 to vector<16x1xf32>
    %25 = arith.maximumf %23, %24 : vector<16x1xf32>
    %26 = vector.broadcast %19 : vector<16x1xf32> to vector<16x128xf32>
    %27 = arith.subf %12, %26 : vector<16x128xf32>
    %cst_10 = arith.constant 9.99999996E-13 : f32
    %28 = vector.broadcast %cst_10 : f32 to vector<16x1xf32>
    %29 = arith.addf %25, %28 : vector<16x1xf32>
    %30 = math.rsqrt %29 : vector<16x1xf32>
    %31 = vector.broadcast %30 : vector<16x1xf32> to vector<16x128xf32>
    %32 = arith.mulf %27, %31 : vector<16x128xf32>
    %33 = vector.broadcast %2 : vector<1x128xf32> to vector<16x128xf32>
    %34 = arith.mulf %32, %33 : vector<16x128xf32>
    %35 = vector.broadcast %3 : vector<1x128xf32> to vector<16x128xf32>
    %36 = arith.addf %34, %35 : vector<16x128xf32>
    %c0_11 = arith.constant 0 : index
    %c0_12 = arith.constant 0 : index
    %37 = vector.load %arg2[%c0_11, %c0_12] : memref<16x4xf32, #tpu.memory_space<vmem>>, vector<16x4xf32>
    %c0_13 = arith.constant 0 : index
    %c0_14 = arith.constant 0 : index
    %38 = vector.load %arg4[%c0_13, %c0_14] : memref<4x128xf32, #tpu.memory_space<vmem>>, vector<4x128xf32>
    %cst_15 = arith.constant dense<0.000000e+00> : vector<16x128xf32>
    %39 = tpu.matmul %37, %38, %cst_15 {dimension_numbers = #tpu.dot_dimension_numbers<[1], [0], [0], [1], [0, 0, 1, 1], [], []>} : vector<16x4xf32>, vector<4x128xf32>, vector<16x128xf32> -> vector<16x128xf32>
    %40 = vector.broadcast %4 : vector<1x128xf32> to vector<16x128xf32>
    %41 = arith.addf %39, %40 : vector<16x128xf32>
    %cst_16 = arith.constant dense<0.000000e+00> : vector<16xf32>
    %42 = vector.multi_reduction <add>, %41, %cst_16 [1] : vector<16x128xf32> to vector<16xf32>
    %43 = vector.shape_cast %42 : vector<16xf32> to vector<16x1xf32>
    %44 = arith.mulf %41, %41 : vector<16x128xf32>
    %cst_17 = arith.constant dense<0.000000e+00> : vector<16xf32>
    %45 = vector.multi_reduction <add>, %44, %cst_17 [1] : vector<16x128xf32> to vector<16xf32>
    %46 = vector.shape_cast %45 : vector<16xf32> to vector<16x1xf32>
    %cst_18 = arith.constant 7.812500e-03 : f32
    %47 = vector.broadcast %cst_18 : f32 to vector<16x1xf32>
    %48 = arith.mulf %43, %47 : vector<16x1xf32>
    %cst_19 = arith.constant 7.812500e-03 : f32
    %49 = vector.broadcast %cst_19 : f32 to vector<16x1xf32>
    %50 = arith.mulf %46, %49 : vector<16x1xf32>
    %51 = arith.mulf %48, %48 : vector<16x1xf32>
    %52 = arith.subf %50, %51 : vector<16x1xf32>
    %cst_20 = arith.constant 0.000000e+00 : f32
    %53 = vector.broadcast %cst_20 : f32 to vector<16x1xf32>
    %54 = arith.maximumf %52, %53 : vector<16x1xf32>
    %55 = vector.broadcast %48 : vector<16x1xf32> to vector<16x128xf32>
    %56 = arith.subf %41, %55 : vector<16x128xf32>
    %cst_21 = arith.constant 9.99999996E-13 : f32
    %57 = vector.broadcast %cst_21 : f32 to vector<16x1xf32>
    %58 = arith.addf %54, %57 : vector<16x1xf32>
    %59 = math.rsqrt %58 : vector<16x1xf32>
    %60 = vector.broadcast %59 : vector<16x1xf32> to vector<16x128xf32>
    %61 = arith.mulf %56, %60 : vector<16x128xf32>
    %62 = vector.broadcast %5 : vector<1x128xf32> to vector<16x128xf32>
    %63 = arith.mulf %61, %62 : vector<16x128xf32>
    %64 = vector.broadcast %6 : vector<1x128xf32> to vector<16x128xf32>
    %65 = arith.addf %63, %64 : vector<16x128xf32>
    %66 = arith.addf %36, %65 : vector<16x128xf32>
    %cst_22 = arith.constant 5.000000e-01 : f32
    %67 = vector.broadcast %cst_22 : f32 to vector<16x128xf32>
    %68 = arith.mulf %66, %67 : vector<16x128xf32>
    %c0_23 = arith.constant 0 : index
    %c0_24 = arith.constant 0 : index
    %69 = vector.load %arg6[%c0_23, %c0_24] : memref<16x128xf32, #tpu.memory_space<vmem>>, vector<16x128xf32>
    tpu.vector_store %arg6[%c0_23, %c0_24], %68 {strides = array<i32>} : memref<16x128xf32, #tpu.memory_space<vmem>>, vector<16x128xf32>,
    return
  }
  func.func @transform_0(%arg0: i32) -> (i32, i32) {
    %c0_i32 = arith.constant 0 : i32
    %c0_i32_0 = arith.constant 0 : i32
    return %arg0, %c0_i32 : i32, i32
  }
  func.func @transform_1(%arg0: i32) -> (i32, i32) {
    %c0_i32 = arith.constant 0 : i32
    %c0_i32_0 = arith.constant 0 : i32
    return %arg0, %c0_i32 : i32, i32
  }
  func.func @transform_2(%arg0: i32) -> (i32, i32) {
    %c0_i32 = arith.constant 0 : i32
    %c0_i32_0 = arith.constant 0 : i32
    %c0_i32_1 = arith.constant 0 : i32
    return %c0_i32, %c0_i32_0 : i32, i32
  }
  func.func @transform_3(%arg0: i32) -> (i32, i32) {
    %c0_i32 = arith.constant 0 : i32
    %c0_i32_0 = arith.constant 0 : i32
    %c0_i32_1 = arith.constant 0 : i32
    return %c0_i32, %c0_i32_0 : i32, i32
  }
  func.func @transform_4(%arg0: i32) -> (i32, i32) {
    %c0_i32 = arith.constant 0 : i32
    %c0_i32_0 = arith.constant 0 : i32
    %c0_i32_1 = arith.constant 0 : i32
    return %c0_i32, %c0_i32_0 : i32, i32
  }
  func.func @transform_5(%arg0: i32) -> (i32, i32) {
    %c0_i32 = arith.constant 0 : i32
    %c0_i32_0 = arith.constant 0 : i32
    return %arg0, %c0_i32 : i32, i32
  }
}

</mosaic_0001>

<bundles_post_ra>
// kernel: tpu_custom_call.1
= control target key start
LH: loop header
LB: loop body
LE: loop exit
PB: predicated region body
PF: predicated region fallthrough
CT: control target
= control target key end

     0   :  { %10 = vsyncpa [#allocation3], 0  ;;  %s704_s0 = inlined_call_operand.hbm [shape: f32[16,32], index: 0, kind: input, shape index: {}]   ;;  %s705_s1 = inlined_call_operand.hbm [shape: f32[16,4], index: 1, kind: input, shape index: {}]   ;;  %s706_s2 = inlined_call_operand.hbm [shape: bf16[32,128], index: 2, kind: input, shape index: {}]   ;;  %s707_s3 = inlined_call_operand.hbm [shape: f32[4,128], index: 3, kind: input, shape index: {}]   ;;  %s708_s4 = inlined_call_operand.hbm [shape: f32[8,128], index: 4, kind: input, shape index: {}]   ;;  %s709_s5 = inlined_call_operand.hbm [shape: f32[16,128], index: 5, kind: output, shape index: {}]  }
   0x1   :  { %11 = vsyncpa [#allocation6], 0 }
   0x2   :  { %12 = vsyncpa [#allocation9], 0 }
   0x3   :  { %13 = vsyncpa [#allocation4], 0  ;;  %s540_s18 = smov [#allocation5]   ;;  %s541_s20 = smov [#allocation8]  }
   0x4   :  { %s31_s19 = sshll.u32 %s540_s18, 4  ;;  %s56_s21 = sshll.u32 %s541_s20, 4  ;;  %s32_s19 = int_to_ptr.vmem [resolvable:$true] %s31_s19  ;;  %s57_s21 = int_to_ptr.vmem [resolvable:$true] %s56_s21 }
   0x5   :  { %s400_s24 = scalar_lea.hbm %s705_s1, 256 }
   0x6   :  { %p401_p0 = scmp.ne.s32.totalorder %s705_s1, %s400_s24  ;;  %p404_p1 = scmp.lt.u32.totalorder %s400_s24, %s705_s1 }
   0x8   :  { %p406_p2 = pnand %p404_p1, %p401_p0 }
   0xa   :  { %409 = shalt.err (!%p406_p2)
}
   0xb   :  { %s410_s29 = scalar_lea.vmem %s32_s19, 256  ;;  %p415_p4 = scmp.lt.s32.totalorder %s32_s19, %s32_s19 }
   0xc   :  { %p411_p3 = scmp.ne.s32.totalorder %s32_s19, %s410_s29  ;;  %p416_p5 = scmp.lt.s32.totalorder %s410_s29, %s410_s29 }
   0xe   :  { %p417_p6 = por %p416_p5, %p415_p4 }
  0x10   :  { %p418_p7 = pnand %p417_p6, %p411_p3 }
  0x12   :  { %421 = shalt.err (!%p418_p7)
}
  0x13   :  { %s542_s30 = smov 128   ;;  %s543_s6 = smov 8  }
  0x14   :  { %37 = dma.hbm_to_vmem [thread:$0]  %s705_s1, 256, %s32_s19, [#allocation6], %s542_s30, %s542_s30, %s543_s6  }
  0x15   :  { %s422_s11 = scalar_lea.hbm %s707_s3, 64 }
  0x16   :  { %p423_p8 = scmp.ne.s32.totalorder %s707_s3, %s422_s11  ;;  %p426_p9 = scmp.lt.u32.totalorder %s422_s11, %s707_s3 }
  0x18   :  { %p428_p10 = pnand %p426_p9, %p423_p8 }
  0x1a   :  { %431 = shalt.err (!%p428_p10)
}
  0x1b   :  { %s432_s16 = scalar_lea.vmem %s57_s21, 64  ;;  %p437_p12 = scmp.lt.s32.totalorder %s57_s21, %s57_s21 }
  0x1c   :  { %p433_p11 = scmp.ne.s32.totalorder %s57_s21, %s432_s16  ;;  %p438_p13 = scmp.lt.s32.totalorder %s432_s16, %s432_s16 }
  0x1e   :  { %p439_p0 = por %p438_p13, %p437_p12 }
  0x20   :  { %p440_p1 = pnand %p439_p0, %p433_p11 }
  0x22   :  { %443 = shalt.err (!%p440_p1)
}
  0x23   :  { %59 = dma.hbm_to_vmem [thread:$0]  %s707_s3, 64, %s57_s21, [#allocation9]  }
  0x24   :  { %s544_s18 = smov [#allocation2]   ;;  %s545_s20 = smov [#allocation7]  }
  0x25   :  { %s19_s19 = sshll.u32 %s544_s18, 4  ;;  %s43_s22 = sshll.u32 %s545_s20, 4  ;;  %s20_s19 = int_to_ptr.vmem [resolvable:$true] %s19_s19  ;;  %s609_s22 = int_to_ptr.vmem [resolvable:$true] %s43_s22 }
  0x26   :  { %s444_s25 = scalar_lea.hbm %s704_s0, 256 }
  0x27   :  { %p445_p2 = scmp.ne.s32.totalorder %s704_s0, %s444_s25  ;;  %p448_p3 = scmp.lt.u32.totalorder %s444_s25, %s704_s0 }
  0x29   :  { %p450_p4 = pnand %p448_p3, %p445_p2 }
  0x2b   :  { %453 = shalt.err (!%p450_p4)
}
  0x2c   :  { %s454_s3 = scalar_lea.vmem %s20_s19, 256  ;;  %p459_p6 = scmp.lt.s32.totalorder %s20_s19, %s20_s19 }
  0x2d   :  { %p455_p5 = scmp.ne.s32.totalorder %s20_s19, %s454_s3  ;;  %p460_p7 = scmp.lt.s32.totalorder %s454_s3, %s454_s3 }
  0x2f   :  { %p461_p8 = por %p460_p7, %p459_p6 }
  0x31   :  { %p462_p9 = pnand %p461_p8, %p455_p5 }
  0x33   :  { %465 = shalt.err (!%p462_p9)
}
  0x34   :  { %25 = dma.hbm_to_vmem [thread:$0]  %s704_s0, 256, %s20_s19, [#allocation3], %s542_s30, %s542_s30, %s543_s6  }
  0x35   :  { %s466_s10 = scalar_lea.hbm %s706_s2, 256 }
  0x36   :  { %p467_p10 = scmp.ne.s32.totalorder %s706_s2, %s466_s10  ;;  %p470_p11 = scmp.lt.u32.totalorder %s466_s10, %s706_s2 }
  0x38   :  { %p472_p12 = pnand %p470_p11, %p467_p10 }
  0x3a   :  { %475 = shalt.err (!%p472_p12)
}
  0x3b   :  { %s476_s15 = scalar_lea.vmem %s609_s22, 256  ;;  %p481_p0 = scmp.lt.s32.totalorder %s609_s22, %s609_s22 }
  0x3c   :  { %p477_p13 = scmp.ne.s32.totalorder %s609_s22, %s476_s15  ;;  %p482_p1 = scmp.lt.s32.totalorder %s476_s15, %s476_s15 }
  0x3e   :  { %p483_p2 = por %p482_p1, %p481_p0 }
  0x40   :  { %p484_p3 = pnand %p483_p2, %p477_p13 }
  0x42   :  { %487 = shalt.err (!%p484_p3)
}
  0x43   :  { %s546_s0 = smov 64   ;;  %s547_s16 = smov 4  }
  0x44   :  { %49 = dma.hbm_to_vmem [thread:$0]  %s706_s2, 256, %s609_s22, [#allocation6], %s546_s0, %s546_s0, %s547_s16  }
  0x45   :  { %s548_s18 = smov [#allocation10]   ;;  %s488_s24 = scalar_lea.hbm %s708_s4, 128 }
  0x46   :  { %s66_s19 = sshll.u32 %s548_s18, 4  ;;  %p489_p4 = scmp.ne.s32.totalorder %s708_s4, %s488_s24  ;;  %s67_s19 = int_to_ptr.vmem [resolvable:$true] %s66_s19 }
  0x47   :  { %p492_p5 = scmp.lt.u32.totalorder %s488_s24, %s708_s4 }
  0x49   :  { %p494_p6 = pnand %p492_p5, %p489_p4 }
  0x4b   :  { %497 = shalt.err (!%p494_p6)
}
  0x4c   :  { %s498_s29 = scalar_lea.vmem %s67_s19, 128  ;;  %p503_p8 = scmp.lt.s32.totalorder %s67_s19, %s67_s19 }
  0x4d   :  { %p499_p7 = scmp.ne.s32.totalorder %s67_s19, %s498_s29  ;;  %p504_p9 = scmp.lt.s32.totalorder %s498_s29, %s498_s29 }
  0x4f   :  { %p505_p10 = por %p504_p9, %p503_p8 }
  0x51   :  { %p506_p11 = pnand %p505_p10, %p499_p7 }
  0x53   :  { %509 = shalt.err (!%p506_p11)
}
  0x54   :  { %69 = dma.hbm_to_vmem [thread:$0]  %s708_s4, 128, %s67_s19, [#allocation9]  }
  0x55   :  { %532 = dma.done.wait [#allocation3], 256  }
  0x56   :  { %533 = vsyncadd [#allocation3], 4294967040 }
  0x57   :  { %534 = dma.done.wait [#allocation6], 512  }
  0x58   :  { %535 = vsyncadd [#allocation6], 4294966784 }
  0x59   :  { %536 = dma.done.wait [#allocation9], 192  }
  0x5a   :  { %537 = vsyncadd [#allocation9], 4294967104  ;;  %v549_v0 = vmov 0.0   ;;  %vm550_vm0 = vmmov 0   ;;  %vm209_vm1 = vcmask 1043456   ;;  %vm202_vm2 = vcmask 31744  }
  0x5b   :  { %365 = vmatprep.subr.bf16.mxu0 %v549_v0  ;;  %369 = vmatprep.mubr.msk.bf16.mxu0 %vm550_vm0, %v549_v0  ;;  %v197_v1 = vld [vmem:[#allocation8] sm:$0xf]  ;;  %v390_v3 = vld [vmem:[#allocation7] sm:$0xff]   ;;  %v196_v4 = vld [vmem:[#allocation5 + $0x8] sm:$0xff]  ;;  %vm110_vm3 = vcmask 261120   ;;  %v94_v9 = vlaneseq  ;;  %s551_s4 = smov [#allocation11]  }
  0x5c   :  { %v195_v2 = vld [vmem:[#allocation5] sm:$0xff]  ;;  %373 = vmatprep.subr.msk.mxu1 %vm209_vm1, %v197_v1  ;;  %366 = vmatpush3.bf16.msra.mxu0 %v390_v3  ;;  %v391_v5 = vld [vmem:[#allocation7 + $0x8] sm:$0xff]   ;;  %v87_v6 = vld [vmem:[#allocation2] sm:$0xff]  ;;  %s339_s3 = sshll.u32 %s551_s4, 4  ;;  %s340_s3 = int_to_ptr.vmem [resolvable:$true] %s339_s3 }
  0x5d   :  { %375 = vmatprep.mubr.msk.f32.mxu1 %vm202_vm2, %v195_v2  ;;  %374 = vmatpush3.msk.msra.mxu1 %vm209_vm1, %v197_v1  ;;  %v88_v7 = vld [vmem:[#allocation2 + $0x8] sm:$0xff]  ;;  %v655_v10 = vshrl.u32 %v94_v9, 7  ;;  %v658_v12 = vld [vmem:[#allocation10] sm:$0xff]  ;;  %s510_s21 = scalar_lea.vmem %s340_s3, 256  ;;  %p515_p13 = scmp.lt.s32.totalorder %s340_s3, %s340_s3 }
  0x5e   :  { %376 = vmatmul.mubr.msk.f32.vlgmr.msra.gmra.mrb[0].mxu1 %vm202_vm2, %v196_v4  ;;  %367 = vmatprep.subr.bf16.mxu0 %v549_v0  ;;  %v89_v8 = vpack.c.bf16 %v88_v7, %v87_v6  ;;  %p511_p12 = scmp.ne.s32.totalorder %s340_s3, %s510_s21  ;;  %p516_p0 = scmp.lt.s32.totalorder %s510_s21, %s510_s21 }
  0x5f   :  { %v200_v11 = vsub.s32 3, %v655_v10  ;;  %v96_v15 = vsub.s32 0, %v655_v10  ;;  %v185_v62 = vsub.s32 1, %v655_v10  ;;  %v318_v63 = vsub.s32 4, %v655_v10 }
  0x60   :  { %368 = vmatpush3.bf16.msra.mxu0 %v391_v5  ;;  %v191_v2 = vsub.s32 2, %v655_v10  ;;  %v324_v3 = vsub.s32 5, %v655_v10  ;;  %p517_p1 = por %p516_p0, %p515_p13 }
  0x61   :  { %v201_v13 = vrot.slane %v658_v12, %v200_v11  ;;  %v97_v19 = vrot.slane %v658_v12, %v96_v15  ;;  %v186_v0 = vrot.slane %v658_v12, %v185_v62  ;;  %v319_v7 = vrot.slane %v658_v12, %v318_v63 }
  0x62   :  { %p518_p2 = pnand %p517_p1, %p511_p12 }
  0x63   :  { %370 = vmatmul.mubr.msk.bf16.vlgmr.msra.gmra.mrb[0].mxu0 %vm110_vm3, %v89_v8 }
 0x131   :  { %v377_v14 = vpop.f32.mrb[0].mxu1 }
 0x132   :  { %v662_v16 = vadd.f32 %v377_v14, %v201_v13  ;;  %v279_v17 = vpop.f32.mrb[1].mxu1  ;;  %v192_v14 = vrot.slane %v658_v12, %v191_v2 }
 0x133   :  { %v665_v18 = vadd.f32 %v279_v17, %v201_v13  ;;  %v325_v17 = vrot.slane %v658_v12, %v324_v3 }
 0x134   :  { %290 = vadd.xlane.f32.xlu1 %v662_v16  ;;  %v293_v27 = vmul.f32 %v662_v16, %v662_v16 }
 0x135   :  { %v292_v29 = vmul.f32 %v665_v18, %v665_v18 }
 0x136   :  { %v148_v20 = vpop.f32.mrb[0].mxu0 }
 0x137   :  { %v669_v21 = vadd.f32 %v148_v20, %v97_v19  ;;  %v371_v22 = vpop.f32.mrb[1].mxu0 }
 0x138   :  { %288 = vadd.xlane.f32.xlu1 %v665_v18  ;;  %v151_v23 = vpop.f32.mrb[2].mxu0 }
 0x139   :  { %v152_v24 = vadd.f32 %v151_v23, %v97_v19  ;;  %v372_v25 = vpop.f32.mrb[3].mxu0  ;;  %155 = vadd.xlane.f32.xlu0 %v669_v21  ;;  %v159_v28 = vmul.f32 %v669_v21, %v669_v21 }
 0x13b   :  { %v160_v26 = vmul.f32 %v152_v24, %v152_v24 }
 0x13d   :  { %163 = vadd.xlane.f32.xlu1 %v160_v26  ;;  %157 = vadd.xlane.f32.xlu0 %v152_v24 }
 0x141   :  { %296 = vadd.xlane.f32.xlu1 %v293_v27  ;;  %161 = vadd.xlane.f32.xlu0 %v159_v28 }
 0x145   :  { %294 = vadd.xlane.f32.xlu0 %v292_v29 }
 0x1c1   :  { %v291_v30 = vpop.xlane.xlu1 %290 }
 0x1c2   :  { %v299_v37 = vmul.f32 0.0078125, %v291_v30 }
 0x1c4   :  { %v303_v40 = vmul.f32 %v299_v37, %v299_v37  ;;  %v309_v5 = vsub.f32 %v662_v16, %v299_v37 }
 0x1c5   :  { %v289_v31 = vpop.xlane.xlu1 %288 }
 0x1c6   :  { %v156_v32 = vpop.xlane.xlu0 %155  ;;  %v298_v47 = vmul.f32 0.0078125, %v289_v31 }
 0x1c7   :  { %v165_v35 = vmul.f32 0.0078125, %v156_v32 }
 0x1c8   :  { %v302_v51 = vmul.f32 %v298_v47, %v298_v47  ;;  %v308_v20 = vsub.f32 %v665_v18, %v298_v47 }
 0x1c9   :  { %v169_v43 = vmul.f32 %v165_v35, %v165_v35  ;;  %v175_v9 = vsub.f32 %v669_v21, %v165_v35 }
 0x1ca   :  { %v164_v33 = vpop.xlane.xlu1 %163  ;;  %v158_v34 = vpop.xlane.xlu0 %157 }
 0x1cb   :  { %v166_v36 = vmul.f32 0.0078125, %v158_v34  ;;  %v168_v38 = vmul.f32 0.0078125, %v164_v33 }
 0x1cd   :  { %v170_v39 = vmul.f32 %v166_v36, %v166_v36  ;;  %v176_v1 = vsub.f32 %v152_v24, %v166_v36 }
 0x1ce   :  { %v297_v41 = vpop.xlane.xlu1 %296  ;;  %v162_v42 = vpop.xlane.xlu0 %161 }
 0x1cf   :  { %v172_v44 = vsub.f32 %v168_v38, %v170_v39  ;;  %v301_v45 = vmul.f32 0.0078125, %v297_v41  ;;  %v167_v46 = vmul.f32 0.0078125, %v162_v42 }
 0x1d1   :  { %v174_v48 = vmax.f32 %v172_v44, 0.0  ;;  %v305_v49 = vsub.f32 %v301_v45, %v303_v40  ;;  %v171_v50 = vsub.f32 %v167_v46, %v169_v43 }
 0x1d2   :  { %v295_v52 = vpop.xlane.xlu0 %294 }
 0x1d3   :  { %v178_v53 = vadd.f32 1e-12, %v174_v48  ;;  %v307_v54 = vmax.f32 %v305_v49, 0.0  ;;  %v173_v55 = vmax.f32 %v171_v50, 0.0  ;;  %v300_v56 = vmul.f32 0.0078125, %v295_v52 }
 0x1d5   :  { %392 = vrsqrt.f32 %v178_v53  ;;  %v311_v57 = vadd.f32 1e-12, %v307_v54  ;;  %v177_v58 = vadd.f32 1e-12, %v173_v55  ;;  %v304_v59 = vsub.f32 %v300_v56, %v302_v51 }
 0x1d7   :  { %394 = vrsqrt.f32 %v311_v57  ;;  %v306_v60 = vmax.f32 %v304_v59, 0.0 }
 0x1d8   :  { %396 = vrsqrt.f32 %v177_v58 }
 0x1d9   :  { %v310_v61 = vadd.f32 1e-12, %v306_v60 }
 0x1db   :  { %398 = vrsqrt.f32 %v310_v61 }
 0x1df   :  { %v393_v4 = vpop.eup %392 }
 0x1e0   :  { %v182_v6 = vmul.f32 %v393_v4, %v176_v1 }
 0x1e1   :  { %v395_v8 = vpop.eup %394 }
 0x1e2   :  { %v397_v11 = vpop.eup %396  ;;  %v188_v13 = vmul.f32 %v186_v0, %v182_v6  ;;  %v315_v15 = vmul.f32 %v395_v8, %v309_v5 }
 0x1e3   :  { %v181_v19 = vmul.f32 %v397_v11, %v175_v9 }
 0x1e4   :  { %v321_v10 = vmul.f32 %v319_v7, %v315_v15  ;;  %v194_v16 = vadd.f32 %v192_v14, %v188_v13 }
 0x1e5   :  { %v399_v22 = vpop.eup %398  ;;  %v187_v23 = vmul.f32 %v186_v0, %v181_v19 }
 0x1e6   :  { %v314_v24 = vmul.f32 %v399_v22, %v308_v20  ;;  %v327_v25 = vadd.f32 %v325_v17, %v321_v10 }
 0x1e7   :  { %v193_v28 = vadd.f32 %v192_v14, %v187_v23 }
 0x1e8   :  { %v320_v26 = vmul.f32 %v319_v7, %v314_v24  ;;  %v329_v27 = vadd.f32 %v327_v25, %v194_v16 }
 0x1ea   :  { %v326_v21 = vadd.f32 %v325_v17, %v320_v26  ;;  %v331_v29 = vmul.f32 0.5, %v329_v27 }
 0x1ec   :  { %v328_v30 = vadd.f32 %v326_v21, %v193_v28  ;;  %333 = vst [vmem:[#allocation11 + $0x8] sm:$0xff] %v331_v29 }
 0x1ee   :  { %v330_v31 = vmul.f32 0.5, %v328_v30 }
 0x1f0   :  { %332 = vst [vmem:[#allocation11] sm:$0xff] %v330_v31 }
 0x1f1   :  { %521 = shalt.err (!%p518_p2)
}
 0x1f2   :  { %s522_s9 = scalar_lea.hbm %s709_s5, 256 }
 0x1f3   :  { %p523_p3 = scmp.ne.s32.totalorder %s709_s5, %s522_s9  ;;  %p526_p4 = scmp.lt.u32.totalorder %s522_s9, %s709_s5 }
 0x1f5   :  { %p528_p5 = pnand %p526_p4, %p523_p3 }
 0x1f7   :  { %531 = shalt.err (!%p528_p5)
}
 0x1f8   :  { %345 = dma.vmem_to_hbm [thread:$0]  %s340_s3, 256, %s709_s5, [#allocation4], %s542_s30, %s542_s30, %s543_s6  }
 0x1f9   :  { %538 = dma.done.wait [#allocation4], 256  }
 0x1fa   :  { %539 = vsyncadd [#allocation4], 4294967040 }
 0x1fb   :  { %349 = vsyncpa [#allocation3], 1 }
 0x1fc   :  { %350 = vsyncpa [#allocation6], 1 }
 0x1fd   :  { %351 = vsyncpa [#allocation9], 1 }
 0x1fe   :  { %352 = vsyncpa [#allocation4], 1 }

// kernel: tpu_custom_call.1
= control target key start
LH: loop header
LB: loop body
LE: loop exit
PB: predicated region body
PF: predicated region fallthrough
CT: control target
= control target key end

     0   :  { %10 = vsyncpa [#allocation3], 0  ;;  %s704_s0 = inlined_call_operand.hbm [shape: f32[16,32], index: 0, kind: input, shape index: {}]   ;;  %s705_s1 = inlined_call_operand.hbm [shape: f32[16,4], index: 1, kind: input, shape index: {}]   ;;  %s706_s2 = inlined_call_operand.hbm [shape: bf16[32,128], index: 2, kind: input, shape index: {}]   ;;  %s707_s3 = inlined_call_operand.hbm [shape: f32[4,128], index: 3, kind: input, shape index: {}]   ;;  %s708_s4 = inlined_call_operand.hbm [shape: f32[8,128], index: 4, kind: input, shape index: {}]   ;;  %s709_s5 = inlined_call_operand.hbm [shape: f32[16,128], index: 5, kind: output, shape index: {}]  }
   0x1   :  { %11 = vsyncpa [#allocation6], 0 }
   0x2   :  { %12 = vsyncpa [#allocation9], 0 }
   0x3   :  { %13 = vsyncpa [#allocation4], 0  ;;  %s540_s18 = smov [#allocation5]   ;;  %s541_s20 = smov [#allocation8]  }
   0x4   :  { %s31_s19 = sshll.u32 %s540_s18, 4  ;;  %s56_s21 = sshll.u32 %s541_s20, 4  ;;  %s32_s19 = int_to_ptr.vmem [resolvable:$true] %s31_s19  ;;  %s57_s21 = int_to_ptr.vmem [resolvable:$true] %s56_s21 }
   0x5   :  { %s400_s24 = scalar_lea.hbm %s705_s1, 256 }
   0x6   :  { %p401_p0 = scmp.ne.s32.totalorder %s705_s1, %s400_s24  ;;  %p404_p1 = scmp.lt.u32.totalorder %s400_s24, %s705_s1 }
   0x8   :  { %p406_p2 = pnand %p404_p1, %p401_p0 }
   0xa   :  { %409 = shalt.err (!%p406_p2)
}
   0xb   :  { %s410_s29 = scalar_lea.vmem %s32_s19, 256  ;;  %p415_p4 = scmp.lt.s32.totalorder %s32_s19, %s32_s19 }
   0xc   :  { %p411_p3 = scmp.ne.s32.totalorder %s32_s19, %s410_s29  ;;  %p416_p5 = scmp.lt.s32.totalorder %s410_s29, %s410_s29 }
   0xe   :  { %p417_p6 = por %p416_p5, %p415_p4 }
  0x10   :  { %p418_p7 = pnand %p417_p6, %p411_p3 }
  0x12   :  { %421 = shalt.err (!%p418_p7)
}
  0x13   :  { %s542_s30 = smov 128   ;;  %s543_s6 = smov 8  }
  0x14   :  { %37 = dma.hbm_to_vmem [thread:$0]  %s705_s1, 256, %s32_s19, [#allocation6], %s542_s30, %s542_s30, %s543_s6  }
  0x15   :  { %s422_s11 = scalar_lea.hbm %s707_s3, 64 }
  0x16   :  { %p423_p8 = scmp.ne.s32.totalorder %s707_s3, %s422_s11  ;;  %p426_p9 = scmp.lt.u32.totalorder %s422_s11, %s707_s3 }
  0x18   :  { %p428_p10 = pnand %p426_p9, %p423_p8 }
  0x1a   :  { %431 = shalt.err (!%p428_p10)
}
  0x1b   :  { %s432_s16 = scalar_lea.vmem %s57_s21, 64  ;;  %p437_p12 = scmp.lt.s32.totalorder %s57_s21, %s57_s21 }
  0x1c   :  { %p433_p11 = scmp.ne.s32.totalorder %s57_s21, %s432_s16  ;;  %p438_p13 = scmp.lt.s32.totalorder %s432_s16, %s432_s16 }
  0x1e   :  { %p439_p0 = por %p438_p13, %p437_p12 }
  0x20   :  { %p440_p1 = pnand %p439_p0, %p433_p11 }
  0x22   :  { %443 = shalt.err (!%p440_p1)
}
  0x23   :  { %59 = dma.hbm_to_vmem [thread:$0]  %s707_s3, 64, %s57_s21, [#allocation9]  }
  0x24   :  { %s544_s18 = smov [#allocation2]   ;;  %s545_s20 = smov [#allocation7]  }
  0x25   :  { %s19_s19 = sshll.u32 %s544_s18, 4  ;;  %s43_s22 = sshll.u32 %s545_s20, 4  ;;  %s20_s19 = int_to_ptr.vmem [resolvable:$true] %s19_s19  ;;  %s609_s22 = int_to_ptr.vmem [resolvable:$true] %s43_s22 }
  0x26   :  { %s444_s25 = scalar_lea.hbm %s704_s0, 256 }
  0x27   :  { %p445_p2 = scmp.ne.s32.totalorder %s704_s0, %s444_s25  ;;  %p448_p3 = scmp.lt.u32.totalorder %s444_s25, %s704_s0 }
  0x29   :  { %p450_p4 = pnand %p448_p3, %p445_p2 }
  0x2b   :  { %453 = shalt.err (!%p450_p4)
}
  0x2c   :  { %s454_s3 = scalar_lea.vmem %s20_s19, 256  ;;  %p459_p6 = scmp.lt.s32.totalorder %s20_s19, %s20_s19 }
  0x2d   :  { %p455_p5 = scmp.ne.s32.totalorder %s20_s19, %s454_s3  ;;  %p460_p7 = scmp.lt.s32.totalorder %s454_s3, %s454_s3 }
  0x2f   :  { %p461_p8 = por %p460_p7, %p459_p6 }
  0x31   :  { %p462_p9 = pnand %p461_p8, %p455_p5 }
  0x33   :  { %465 = shalt.err (!%p462_p9)
}
  0x34   :  { %25 = dma.hbm_to_vmem [thread:$0]  %s704_s0, 256, %s20_s19, [#allocation3], %s542_s30, %s542_s30, %s543_s6  }
  0x35   :  { %s466_s10 = scalar_lea.hbm %s706_s2, 256 }
  0x36   :  { %p467_p10 = scmp.ne.s32.totalorder %s706_s2, %s466_s10  ;;  %p470_p11 = scmp.lt.u32.totalorder %s466_s10, %s706_s2 }
  0x38   :  { %p472_p12 = pnand %p470_p11, %p467_p10 }
  0x3a   :  { %475 = shalt.err (!%p472_p12)
}
  0x3b   :  { %s476_s15 = scalar_lea.vmem %s609_s22, 256  ;;  %p481_p0 = scmp.lt.s32.totalorder %s609_s22, %s609_s22 }
  0x3c   :  { %p477_p13 = scmp.ne.s32.totalorder %s609_s22, %s476_s15  ;;  %p482_p1 = scmp.lt.s32.totalorder %s476_s15, %s476_s15 }
  0x3e   :  { %p483_p2 = por %p482_p1, %p481_p0 }
  0x40   :  { %p484_p3 = pnand %p483_p2, %p477_p13 }
  0x42   :  { %487 = shalt.err (!%p484_p3)
}
  0x43   :  { %s546_s0 = smov 64   ;;  %s547_s16 = smov 4  }
  0x44   :  { %49 = dma.hbm_to_vmem [thread:$0]  %s706_s2, 256, %s609_s22, [#allocation6], %s546_s0, %s546_s0, %s547_s16  }
  0x45   :  { %s548_s18 = smov [#allocation10]   ;;  %s488_s24 = scalar_lea.hbm %s708_s4, 128 }
  0x46   :  { %s66_s19 = sshll.u32 %s548_s18, 4  ;;  %p489_p4 = scmp.ne.s32.totalorder %s708_s4, %s488_s24  ;;  %s67_s19 = int_to_ptr.vmem [resolvable:$true] %s66_s19 }
  0x47   :  { %p492_p5 = scmp.lt.u32.totalorder %s488_s24, %s708_s4 }
  0x49   :  { %p494_p6 = pnand %p492_p5, %p489_p4 }
  0x4b   :  { %497 = shalt.err (!%p494_p6)
}
  0x4c   :  { %s498_s29 = scalar_lea.vmem %s67_s19, 128  ;;  %p503_p8 = scmp.lt.s32.totalorder %s67_s19, %s67_s19 }
  0x4d   :  { %p499_p7 = scmp.ne.s32.totalorder %s67_s19, %s498_s29  ;;  %p504_p9 = scmp.lt.s32.totalorder %s498_s29, %s498_s29 }
  0x4f   :  { %p505_p10 = por %p504_p9, %p503_p8 }
  0x51   :  { %p506_p11 = pnand %p505_p10, %p499_p7 }
  0x53   :  { %509 = shalt.err (!%p506_p11)
}
  0x54   :  { %69 = dma.hbm_to_vmem [thread:$0]  %s708_s4, 128, %s67_s19, [#allocation9]  }
  0x55   :  { %532 = dma.done.wait [#allocation3], 256  }
  0x56   :  { %533 = vsyncadd [#allocation3], 4294967040 }
  0x57   :  { %534 = dma.done.wait [#allocation6], 512  }
  0x58   :  { %535 = vsyncadd [#allocation6], 4294966784 }
  0x59   :  { %536 = dma.done.wait [#allocation9], 192  }
  0x5a   :  { %537 = vsyncadd [#allocation9], 4294967104  ;;  %v549_v0 = vmov 0.0   ;;  %vm550_vm0 = vmmov 0   ;;  %vm209_vm1 = vcmask 1043456   ;;  %vm202_vm2 = vcmask 31744  }
  0x5b   :  { %365 = vmatprep.subr.bf16.mxu0 %v549_v0  ;;  %369 = vmatprep.mubr.msk.bf16.mxu0 %vm550_vm0, %v549_v0  ;;  %v197_v1 = vld [vmem:[#allocation8] sm:$0xf]  ;;  %v390_v3 = vld [vmem:[#allocation7] sm:$0xff]   ;;  %v196_v4 = vld [vmem:[#allocation5 + $0x8] sm:$0xff]  ;;  %vm110_vm3 = vcmask 261120   ;;  %v94_v9 = vlaneseq  ;;  %s551_s4 = smov [#allocation11]  }
  0x5c   :  { %v195_v2 = vld [vmem:[#allocation5] sm:$0xff]  ;;  %373 = vmatprep.subr.msk.mxu1 %vm209_vm1, %v197_v1  ;;  %366 = vmatpush3.bf16.msra.mxu0 %v390_v3  ;;  %v391_v5 = vld [vmem:[#allocation7 + $0x8] sm:$0xff]   ;;  %v87_v6 = vld [vmem:[#allocation2] sm:$0xff]  ;;  %s339_s3 = sshll.u32 %s551_s4, 4  ;;  %s340_s3 = int_to_ptr.vmem [resolvable:$true] %s339_s3 }
  0x5d   :  { %375 = vmatprep.mubr.msk.f32.mxu1 %vm202_vm2, %v195_v2  ;;  %374 = vmatpush3.msk.msra.mxu1 %vm209_vm1, %v197_v1  ;;  %v88_v7 = vld [vmem:[#allocation2 + $0x8] sm:$0xff]  ;;  %v655_v10 = vshrl.u32 %v94_v9, 7  ;;  %v658_v12 = vld [vmem:[#allocation10] sm:$0xff]  ;;  %s510_s21 = scalar_lea.vmem %s340_s3, 256  ;;  %p515_p13 = scmp.lt.s32.totalorder %s340_s3, %s340_s3 }
  0x5e   :  { %376 = vmatmul.mubr.msk.f32.vlgmr.msra.gmra.mrb[0].mxu1 %vm202_vm2, %v196_v4  ;;  %367 = vmatprep.subr.bf16.mxu0 %v549_v0  ;;  %v89_v8 = vpack.c.bf16 %v88_v7, %v87_v6  ;;  %p511_p12 = scmp.ne.s32.totalorder %s340_s3, %s510_s21  ;;  %p516_p0 = scmp.lt.s32.totalorder %s510_s21, %s510_s21 }
  0x5f   :  { %v200_v11 = vsub.s32 3, %v655_v10  ;;  %v96_v15 = vsub.s32 0, %v655_v10  ;;  %v185_v62 = vsub.s32 1, %v655_v10  ;;  %v318_v63 = vsub.s32 4, %v655_v10 }
  0x60   :  { %368 = vmatpush3.bf16.msra.mxu0 %v391_v5  ;;  %v191_v2 = vsub.s32 2, %v655_v10  ;;  %v324_v3 = vsub.s32 5, %v655_v10  ;;  %p517_p1 = por %p516_p0, %p515_p13 }
  0x61   :  { %v201_v13 = vrot.slane %v658_v12, %v200_v11  ;;  %v97_v19 = vrot.slane %v658_v12, %v96_v15  ;;  %v186_v0 = vrot.slane %v658_v12, %v185_v62  ;;  %v319_v7 = vrot.slane %v658_v12, %v318_v63 }
  0x62   :  { %p518_p2 = pnand %p517_p1, %p511_p12 }
  0x63   :  { %370 = vmatmul.mubr.msk.bf16.vlgmr.msra.gmra.mrb[0].mxu0 %vm110_vm3, %v89_v8 }
 0x131   :  { %v377_v14 = vpop.f32.mrb[0].mxu1 }
 0x132   :  { %v662_v16 = vadd.f32 %v377_v14, %v201_v13  ;;  %v279_v17 = vpop.f32.mrb[1].mxu1  ;;  %v192_v14 = vrot.slane %v658_v12, %v191_v2 }
 0x133   :  { %v665_v18 = vadd.f32 %v279_v17, %v201_v13  ;;  %v325_v17 = vrot.slane %v658_v12, %v324_v3 }
 0x134   :  { %290 = vadd.xlane.f32.xlu1 %v662_v16  ;;  %v293_v27 = vmul.f32 %v662_v16, %v662_v16 }
 0x135   :  { %v292_v29 = vmul.f32 %v665_v18, %v665_v18 }
 0x136   :  { %v148_v20 = vpop.f32.mrb[0].mxu0 }
 0x137   :  { %v669_v21 = vadd.f32 %v148_v20, %v97_v19  ;;  %v371_v22 = vpop.f32.mrb[1].mxu0 }
 0x138   :  { %288 = vadd.xlane.f32.xlu1 %v665_v18  ;;  %v151_v23 = vpop.f32.mrb[2].mxu0 }
 0x139   :  { %v152_v24 = vadd.f32 %v151_v23, %v97_v19  ;;  %v372_v25 = vpop.f32.mrb[3].mxu0  ;;  %155 = vadd.xlane.f32.xlu0 %v669_v21  ;;  %v159_v28 = vmul.f32 %v669_v21, %v669_v21 }
 0x13b   :  { %v160_v26 = vmul.f32 %v152_v24, %v152_v24 }
 0x13d   :  { %163 = vadd.xlane.f32.xlu1 %v160_v26  ;;  %157 = vadd.xlane.f32.xlu0 %v152_v24 }
 0x141   :  { %296 = vadd.xlane.f32.xlu1 %v293_v27  ;;  %161 = vadd.xlane.f32.xlu0 %v159_v28 }
 0x145   :  { %294 = vadd.xlane.f32.xlu0 %v292_v29 }
 0x1c1   :  { %v291_v30 = vpop.xlane.xlu1 %290 }
 0x1c2   :  { %v299_v37 = vmul.f32 0.0078125, %v291_v30 }
 0x1c4   :  { %v303_v40 = vmul.f32 %v299_v37, %v299_v37  ;;  %v309_v5 = vsub.f32 %v662_v16, %v299_v37 }
 0x1c5   :  { %v289_v31 = vpop.xlane.xlu1 %288 }
 0x1c6   :  { %v156_v32 = vpop.xlane.xlu0 %155  ;;  %v298_v47 = vmul.f32 0.0078125, %v289_v31 }
 0x1c7   :  { %v165_v35 = vmul.f32 0.0078125, %v156_v32 }
 0x1c8   :  { %v302_v51 = vmul.f32 %v298_v47, %v298_v47  ;;  %v308_v20 = vsub.f32 %v665_v18, %v298_v47 }
 0x1c9   :  { %v169_v43 = vmul.f32 %v165_v35, %v165_v35  ;;  %v175_v9 = vsub.f32 %v669_v21, %v165_v35 }
 0x1ca   :  { %v164_v33 = vpop.xlane.xlu1 %163  ;;  %v158_v34 = vpop.xlane.xlu0 %157 }
 0x1cb   :  { %v166_v36 = vmul.f32 0.0078125, %v158_v34  ;;  %v168_v38 = vmul.f32 0.0078125, %v164_v33 }
 0x1cd   :  { %v170_v39 = vmul.f32 %v166_v36, %v166_v36  ;;  %v176_v1 = vsub.f32 %v152_v24, %v166_v36 }
 0x1ce   :  { %v297_v41 = vpop.xlane.xlu1 %296  ;;  %v162_v42 = vpop.xlane.xlu0 %161 }
 0x1cf   :  { %v172_v44 = vsub.f32 %v168_v38, %v170_v39  ;;  %v301_v45 = vmul.f32 0.0078125, %v297_v41  ;;  %v167_v46 = vmul.f32 0.0078125, %v162_v42 }
 0x1d1   :  { %v174_v48 = vmax.f32 %v172_v44, 0.0  ;;  %v305_v49 = vsub.f32 %v301_v45, %v303_v40  ;;  %v171_v50 = vsub.f32 %v167_v46, %v169_v43 }
 0x1d2   :  { %v295_v52 = vpop.xlane.xlu0 %294 }
 0x1d3   :  { %v178_v53 = vadd.f32 1e-12, %v174_v48  ;;  %v307_v54 = vmax.f32 %v305_v49, 0.0  ;;  %v173_v55 = vmax.f32 %v171_v50, 0.0  ;;  %v300_v56 = vmul.f32 0.0078125, %v295_v52 }
 0x1d5   :  { %392 = vrsqrt.f32 %v178_v53  ;;  %v311_v57 = vadd.f32 1e-12, %v307_v54  ;;  %v177_v58 = vadd.f32 1e-12, %v173_v55  ;;  %v304_v59 = vsub.f32 %v300_v56, %v302_v51 }
 0x1d7   :  { %394 = vrsqrt.f32 %v311_v57  ;;  %v306_v60 = vmax.f32 %v304_v59, 0.0 }
 0x1d8   :  { %396 = vrsqrt.f32 %v177_v58 }
 0x1d9   :  { %v310_v61 = vadd.f32 1e-12, %v306_v60 }
 0x1db   :  { %398 = vrsqrt.f32 %v310_v61 }
 0x1df   :  { %v393_v4 = vpop.eup %392 }
 0x1e0   :  { %v182_v6 = vmul.f32 %v393_v4, %v176_v1 }
 0x1e1   :  { %v395_v8 = vpop.eup %394 }
 0x1e2   :  { %v397_v11 = vpop.eup %396  ;;  %v188_v13 = vmul.f32 %v186_v0, %v182_v6  ;;  %v315_v15 = vmul.f32 %v395_v8, %v309_v5 }
 0x1e3   :  { %v181_v19 = vmul.f32 %v397_v11, %v175_v9 }
 0x1e4   :  { %v321_v10 = vmul.f32 %v319_v7, %v315_v15  ;;  %v194_v16 = vadd.f32 %v192_v14, %v188_v13 }
 0x1e5   :  { %v399_v22 = vpop.eup %398  ;;  %v187_v23 = vmul.f32 %v186_v0, %v181_v19 }
 0x1e6   :  { %v314_v24 = vmul.f32 %v399_v22, %v308_v20  ;;  %v327_v25 = vadd.f32 %v325_v17, %v321_v10 }
 0x1e7   :  { %v193_v28 = vadd.f32 %v192_v14, %v187_v23 }
 0x1e8   :  { %v320_v26 = vmul.f32 %v319_v7, %v314_v24  ;;  %v329_v27 = vadd.f32 %v327_v25, %v194_v16 }
 0x1ea   :  { %v326_v21 = vadd.f32 %v325_v17, %v320_v26  ;;  %v331_v29 = vmul.f32 0.5, %v329_v27 }
 0x1ec   :  { %v328_v30 = vadd.f32 %v326_v21, %v193_v28  ;;  %333 = vst [vmem:[#allocation11 + $0x8] sm:$0xff] %v331_v29 }
 0x1ee   :  { %v330_v31 = vmul.f32 0.5, %v328_v30 }
 0x1f0   :  { %332 = vst [vmem:[#allocation11] sm:$0xff] %v330_v31 }
 0x1f1   :  { %521 = shalt.err (!%p518_p2)
}
 0x1f2   :  { %s522_s9 = scalar_lea.hbm %s709_s5, 256 }
 0x1f3   :  { %p523_p3 = scmp.ne.s32.totalorder %s709_s5, %s522_s9  ;;  %p526_p4 = scmp.lt.u32.totalorder %s522_s9, %s709_s5 }
 0x1f5   :  { %p528_p5 = pnand %p526_p4, %p523_p3 }
 0x1f7   :  { %531 = shalt.err (!%p528_p5)
}
 0x1f8   :  { %345 = dma.vmem_to_hbm [thread:$0]  %s340_s3, 256, %s709_s5, [#allocation4], %s542_s30, %s542_s30, %s543_s6  }
 0x1f9   :  { %538 = dma.done.wait [#allocation4], 256  }
 0x1fa   :  { %539 = vsyncadd [#allocation4], 4294967040 }
 0x1fb   :  { %349 = vsyncpa [#allocation3], 1 }
 0x1fc   :  { %350 = vsyncpa [#allocation6], 1 }
 0x1fd   :  { %351 = vsyncpa [#allocation9], 1 }
 0x1fe   :  { %352 = vsyncpa [#allocation4], 1 }

</bundles_post_ra>
